<compile_context>
chip_gen: v5e
topology: v5e:2x2
jax: 0.10.0
libtpu: 0.0.40
codegen_flags: <defaults>
</compile_context>

<pallas_src>
import math
import functools

import jax
import jax.numpy as jnp
from jax.experimental import pallas as pl
from jax.experimental.pallas import tpu as pltpu

_SQRT_2_OVER_PI = math.sqrt(2.0 / math.pi)
_INV_SQRT2 = 1.0 / math.sqrt(2.0)
_GELU_COEF = 0.044715


# ------------------------------- kernel ---------------------------------------
def _gelu_math(x, approximate):
    # Elementwise math kept in float32 (v5e VPU/EUP have no bf16 path).
    if approximate:
        # tanh approximation, FMA-friendly: inner = c*x*(1 + 0.044715*x^2)
        t = x * x
        inner = _SQRT_2_OVER_PI * x * (1.0 + _GELU_COEF * t)
        return 0.5 * x * (1.0 + jnp.tanh(inner))
    else:
        # exact form (not exercised in the default-config test below)
        return 0.5 * x * (1.0 + jax.lax.erf(x * _INV_SQRT2))


def _gelu_kernel(x_ref, o_ref, *, approximate):
    x = x_ref[...].astype(jnp.float32)
    o_ref[...] = _gelu_math(x, approximate).astype(o_ref.dtype)


# ------------------------------ wrapper ----------------------------------------
def pallas_gelu(x, *, approximate=True, max_block_rows=1024, lanes=512):
    """Elementwise GELU via a lane-dense, row-tiled Pallas TPU kernel.

    The input is flattened, zero-padded to a (rows_padded, lanes) slab with
    `lanes` a multiple of 128 and the row tile a multiple of 8, processed on a
    1-D parallel grid, then sliced back to the original shape.
    """
    orig_shape = x.shape
    n = x.size

    lanes = max(128, (lanes // 128) * 128)                      # lane axis: k*128
    rows = pl.cdiv(n, lanes)
    block_rows = min(max_block_rows, ((rows + 7) // 8) * 8)     # sublane axis: k*8
    rows_padded = pl.cdiv(rows, block_rows) * block_rows
    total = rows_padded * lanes

    xf = jnp.ravel(x)
    if total != n:
        xf = jnp.pad(xf, (0, total - n))                        # GELU(0) == 0, padding is harmless
    x2 = xf.reshape(rows_padded, lanes)

    kernel = functools.partial(_gelu_kernel, approximate=approximate)
    out2 = pl.pallas_call(
        kernel,
        out_shape=jax.ShapeDtypeStruct((rows_padded, lanes), x.dtype),
        grid_spec=pltpu.PrefetchScalarGridSpec(
            num_scalar_prefetch=0,
            grid=(rows_padded // block_rows,),
            in_specs=[pl.BlockSpec((block_rows, lanes), lambda i: (i, 0))],
            out_specs=pl.BlockSpec((block_rows, lanes), lambda i: (i, 0)),
        ),
        compiler_params=pltpu.CompilerParams(
            dimension_semantics=("parallel",),       # shards row tiles across TCs on v7x
            vmem_limit_bytes=32 * 1024 * 1024,       # safe on v5e/v6e/v7x
        ),
    )(x2)

    return out2.reshape(-1)[:n].reshape(orig_shape)


# --------------------------- pure-JAX reference ---------------------------------
def gelu_reference(x, approximate=True):
    xf = x.astype(jnp.float32)
    if approximate:
        cdf = 0.5 * (1.0 + jnp.tanh(_SQRT_2_OVER_PI * (xf + _GELU_COEF * xf ** 3)))
        return (xf * cdf).astype(x.dtype)
    return (xf * (jax.lax.erf(xf * _INV_SQRT2) + 1.0) * 0.5).astype(x.dtype)


# ------------------------------------ main --------------------------------------
if __name__ == "__main__":
    key = jax.random.PRNGKey(0)
    k1, k2 = jax.random.split(key)

    # Primary test: 4-D activation, small ViT-like shape (B, C, H, W).
    x = jax.random.normal(k1, (2, 4, 16, 16), jnp.float32)
    y = pallas_gelu(x)                                   # approximate=True (module default)
    jax.block_until_ready(y)
    assert y.shape == x.shape and y.dtype == x.dtype
    assert jnp.allclose(y, gelu_reference(x, True), atol=1e-5, rtol=1e-5)

    # Odd, non-lane-aligned size exercises the pad / unpad path.
    x_odd = jax.random.normal(k2, (3, 333), jnp.float32) * 3.0
    y_odd = pallas_gelu(x_odd, approximate=True)
    jax.block_until_ready(y_odd)
    assert jnp.allclose(y_odd, gelu_reference(x_odd, True), atol=1e-5, rtol=1e-5)

    # NOTE: the exact (approximate=False) erf path is implemented in the kernel
    # but the module's default construction uses approximate=True, which is the
    # path exercised here.

    print("KERNEL_OK")
</pallas_src>

<mosaic_0001>
module attributes {stable_mosaic.version = 11 : i64} {
  func.func @_gelu_kernel(%arg0: i32, %arg1: memref<8x512xf32, #tpu.memory_space<vmem>>, %arg2: memref<8x512xf32, #tpu.memory_space<vmem>>) attributes {dimension_semantics = [#tpu.dimension_semantics<parallel>], iteration_bounds = array<i64: 1>, scalar_prefetch = 0 : i64, scratch_operands = 0 : i64, tpu.core_type = #tpu.core_type<tc>, window_params = [{transform_indices = @transform_0, window_bounds = array<i64: 8, 512>}, {transform_indices = @transform_1, window_bounds = array<i64: 8, 512>}]} {
    %c0 = arith.constant 0 : index
    %c0_0 = arith.constant 0 : index
    %0 = vector.load %arg1[%c0, %c0_0] : memref<8x512xf32, #tpu.memory_space<vmem>>, vector<8x512xf32>
    %1 = arith.mulf %0, %0 : vector<8x512xf32>
    %cst = arith.constant 0.797884583 : f32
    %2 = vector.broadcast %cst : f32 to vector<8x512xf32>
    %3 = arith.mulf %2, %0 : vector<8x512xf32>
    %cst_1 = arith.constant 4.471500e-02 : f32
    %4 = vector.broadcast %cst_1 : f32 to vector<8x512xf32>
    %5 = arith.mulf %4, %1 : vector<8x512xf32>
    %cst_2 = arith.constant 1.000000e+00 : f32
    %6 = vector.broadcast %cst_2 : f32 to vector<8x512xf32>
    %7 = arith.addf %6, %5 : vector<8x512xf32>
    %8 = arith.mulf %3, %7 : vector<8x512xf32>
    %cst_3 = arith.constant 5.000000e-01 : f32
    %9 = vector.broadcast %cst_3 : f32 to vector<8x512xf32>
    %10 = arith.mulf %9, %0 : vector<8x512xf32>
    %11 = math.tanh %8 : vector<8x512xf32>
    %cst_4 = arith.constant 1.000000e+00 : f32
    %12 = vector.broadcast %cst_4 : f32 to vector<8x512xf32>
    %13 = arith.addf %12, %11 : vector<8x512xf32>
    %14 = arith.mulf %10, %13 : vector<8x512xf32>
    %c0_5 = arith.constant 0 : index
    %c0_6 = arith.constant 0 : index
    %15 = vector.load %arg2[%c0_5, %c0_6] : memref<8x512xf32, #tpu.memory_space<vmem>>, vector<8x512xf32>
    tpu.vector_store %arg2[%c0_5, %c0_6], %14 {strides = array<i32>} : memref<8x512xf32, #tpu.memory_space<vmem>>, vector<8x512xf32>,
    return
  }
  func.func @transform_0(%arg0: i32) -> (i32, i32) {
    %c0_i32 = arith.constant 0 : i32
    %c0_i32_0 = arith.constant 0 : i32
    return %arg0, %c0_i32 : i32, i32
  }
  func.func @transform_1(%arg0: i32) -> (i32, i32) {
    %c0_i32 = arith.constant 0 : i32
    %c0_i32_0 = arith.constant 0 : i32
    return %arg0, %c0_i32 : i32, i32
  }
}

</mosaic_0001>

<bundles_post_ra>
// kernel: tpu_custom_call.1
= control target key start
LH: loop header
LB: loop body
LE: loop exit
PB: predicated region body
PF: predicated region fallthrough
CT: control target
= control target key end

     0   :  { %6 = vsyncpa [#allocation3], 0  ;;  %s164_s0 = inlined_call_operand.hbm [shape: f32[8,512], index: 0, kind: input, shape index: {}]   ;;  %s165_s1 = inlined_call_operand.hbm [shape: f32[8,512], index: 1, kind: output, shape index: {}]  }
   0x1   :  { %7 = vsyncpa [#allocation4], 0  ;;  %s13_s8 = sshll.u32 %s164_s0, 4  ;;  %s146_s9 = smov [#allocation2]   ;;  %s14_s8 = int_to_ptr.hbm [resolvable:$true] %s13_s8 }
   0x2   :  { %s15_s10 = sshll.u32 %s146_s9, 4  ;;  %s16_s10 = int_to_ptr.vmem [resolvable:$true] %s15_s10 }
   0x3   :  { %18 = dma.hbm_to_vmem [thread:$0]  %s14_s8, 512, %s16_s10, [#allocation3]  }
   0x4   :  { %142 = dma.done.wait [#allocation3], 512  }
   0x5   :  { %143 = vsyncadd [#allocation3], 4294966784  ;;  %v23_v0 = vld [vmem:[#allocation2] sm:$0xff]  ;;  %v24_v1 = vld [vmem:[#allocation2 + $0x8] sm:$0xff]  ;;  %s147_s0 = smov [#allocation5]   ;;  %s74_s14 = sshll.u32 %s165_s1, 4  ;;  %s75_s14 = int_to_ptr.hbm [resolvable:$true] %s74_s14 }
   0x6   :  { %v25_v2 = vld [vmem:[#allocation2 + $0x10] sm:$0xff]  ;;  %v27_v3 = vmul.f32 %v23_v0, %v23_v0  ;;  %v28_v4 = vmul.f32 %v24_v1, %v24_v1  ;;  %v26_v5 = vld [vmem:[#allocation2 + $0x18] sm:$0xff]  ;;  %v31_v6 = vmul.f32 0.7978846, %v23_v0  ;;  %v32_v9 = vmul.f32 0.7978846, %v24_v1 }
   0x7   :  { %v29_v7 = vmul.f32 %v25_v2, %v25_v2  ;;  %v30_v11 = vmul.f32 %v26_v5, %v26_v5  ;;  %v33_v12 = vmul.f32 0.7978846, %v25_v2  ;;  %v34_v16 = vmul.f32 0.7978846, %v26_v5  ;;  %s72_s11 = sshll.u32 %s147_s0, 4  ;;  %s73_s11 = int_to_ptr.vmem [resolvable:$true] %s72_s11 }
   0x8   :  { %v35_v8 = vmul.f32 0.044715, %v27_v3  ;;  %v36_v10 = vmul.f32 0.044715, %v28_v4  ;;  %v47_v24 = vmul.f32 0.5, %v23_v0  ;;  %v48_v26 = vmul.f32 0.5, %v24_v1 }
   0x9   :  { %v37_v13 = vmul.f32 0.044715, %v29_v7  ;;  %v38_v17 = vmul.f32 0.044715, %v30_v11  ;;  %v49_v29 = vmul.f32 0.5, %v25_v2  ;;  %v50_v32 = vmul.f32 0.5, %v26_v5 }
   0xa   :  { %v39_v14 = vadd.f32 1.0, %v35_v8  ;;  %v40_v15 = vadd.f32 1.0, %v36_v10 }
   0xb   :  { %v41_v18 = vadd.f32 1.0, %v37_v13  ;;  %v42_v21 = vadd.f32 1.0, %v38_v17 }
   0xc   :  { %v43_v19 = vmul.f32 %v39_v14, %v31_v6  ;;  %v44_v20 = vmul.f32 %v40_v15, %v32_v9 }
   0xd   :  { %v45_v22 = vmul.f32 %v41_v18, %v33_v12  ;;  %v46_v23 = vmul.f32 %v42_v21, %v34_v16 }
   0xe   :  { %86 = vtanh.f32 %v43_v19 }
   0xf   :  { %88 = vtanh.f32 %v44_v20 }
  0x10   :  { %90 = vtanh.f32 %v45_v22 }
  0x11   :  { %92 = vtanh.f32 %v46_v23 }
  0x14   :  { %v87_v25 = vpop.eup %86 }
  0x15   :  { %v89_v27 = vpop.eup %88  ;;  %v55_v28 = vadd.f32 1.0, %v87_v25 }
  0x16   :  { %v91_v30 = vpop.eup %90  ;;  %v56_v31 = vadd.f32 1.0, %v89_v27 }
  0x17   :  { %v93_v33 = vpop.eup %92  ;;  %v59_v34 = vmul.f32 %v55_v28, %v47_v24  ;;  %v57_v35 = vadd.f32 1.0, %v91_v30 }
  0x18   :  { %v60_v36 = vmul.f32 %v56_v31, %v48_v26  ;;  %v58_v37 = vadd.f32 1.0, %v93_v33 }
  0x19   :  { %63 = vst [vmem:[#allocation5] sm:$0xff] %v59_v34  ;;  %v61_v38 = vmul.f32 %v57_v35, %v49_v29 }
  0x1a   :  { %64 = vst [vmem:[#allocation5 + $0x8] sm:$0xff] %v60_v36  ;;  %v62_v39 = vmul.f32 %v58_v37, %v50_v32 }
  0x1b   :  { %65 = vst [vmem:[#allocation5 + $0x10] sm:$0xff] %v61_v38 }
  0x1c   :  { %66 = vst [vmem:[#allocation5 + $0x18] sm:$0xff] %v62_v39 }
  0x1d   :  { %77 = dma.vmem_to_hbm [thread:$0]  %s73_s11, 512, %s75_s14, [#allocation4]  }
  0x1e   :  { %144 = dma.done.wait [#allocation4], 512  }
  0x1f   :  { %145 = vsyncadd [#allocation4], 4294966784 }
  0x20   :  { %82 = vsyncpa [#allocation3], 1 }
  0x21   :  { %83 = vsyncpa [#allocation4], 1 }

</bundles_post_ra>
